<compile_context>
chip_gen: v6e
topology: v6e:2x2x1
jax: 0.10.0
libtpu: 0.0.40
codegen_flags: <defaults>
</compile_context>

<pallas_src>
import functools

import jax
import jax.numpy as jnp
import numpy as np
from jax.experimental import pallas as pl
from jax.experimental.pallas import tpu as pltpu

EPS = 1e-10


def _whdr_kernel(r1_ref, r2_ref, w_ref, d_ref, out_ref, *, delta):
    # Blocks: r1/r2/w  (NB, Cp) f32 ; darker (NB, Cp) bf16 ; out (8, 128) f32.
    r1 = r1_ref[...]
    r2 = r2_ref[...]
    w = w_ref[...]
    darker = d_ref[...].astype(jnp.float32)          # exact 0.0 / 1.0 / 2.0

    # ratio = r1 / (r2 + eps)  -- push the divide onto the EUP slot.
    ratio = r1 * pl.reciprocal(r2 + jnp.float32(EPS), approx=False)

    border_r = jnp.float32(1.0 + delta)
    border_l = jnp.float32(1.0 / (1.0 + delta))
    zero = jnp.float32(0.0)

    # darker == 1: hinge above 1/(1+delta)
    h1 = jnp.maximum(ratio - border_l, zero)
    # darker == 2: hinge below 1+delta
    h2 = jnp.maximum(border_r - ratio, zero)
    # darker == 0: hinge outside [1/(1+delta), 1+delta]
    h0 = jnp.maximum(ratio - border_r, zero) + jnp.maximum(border_l - ratio, zero)

    hinge = jnp.where(darker == jnp.float32(1.0), h1,
                      jnp.where(darker == jnp.float32(2.0), h2, h0))

    loss_num = jnp.sum(w * hinge, axis=-1, keepdims=True)        # (NB, 1)
    tw = jnp.sum(w, axis=-1, keepdims=True)                      # (NB, 1)
    # Guard tw == 0 (padded / empty images) -> contributes exactly 0.
    per_image = loss_num / jnp.maximum(tw, jnp.float32(EPS))     # (NB, 1)

    block_sum = jnp.sum(per_image, axis=0, keepdims=True)        # (1, 1)
    out_ref[...] = jnp.broadcast_to(block_sum, out_ref.shape)    # (8, 128)


def whdr_test_loss(v_input, comparisons, num_comparisons, delta=0.1):
    """Pallas implementation of WhdrTestLoss.forward.

    v_input:          (N, 1, H, W) float32  (NCHW, like PyTorch)
    comparisons:      (N, C, 6) float32, columns = [x1, y1, x2, y2, darker, weight]
    num_comparisons:  (N,) int32, number of valid rows per image
    returns:          (1,) float32 total loss (matches torch output shape)
    """
    N, _, H, W = v_input.shape
    C = comparisons.shape[1]
    HW = H * W

    comp = comparisons.astype(jnp.float32)
    x1 = comp[..., 0].astype(jnp.int32)
    y1 = comp[..., 1].astype(jnp.int32)
    x2 = comp[..., 2].astype(jnp.int32)
    y2 = comp[..., 3].astype(jnp.int32)
    darker = comp[..., 4]                                        # (N, C) f32
    weight = comp[..., 5]                                        # (N, C) f32

    valid = (jnp.arange(C, dtype=jnp.int32)[None, :] <
             num_comparisons[:, None].astype(jnp.int32))
    w = jnp.where(valid, weight, jnp.float32(0.0))               # 0 for padded rows

    # ---- Block / pad sizing (VMEM-budget driven) -------------------------
    Cp = ((C + 127) // 128) * 128                                # lane padding
    bytes_per_image = Cp * (3 * 4 + 2)                           # 3xf32 + 1xbf16
    target_block_bytes = 4 * 1024 * 1024                         # ~4 MiB / step
    nb = max(16, target_block_bytes // bytes_per_image)
    nb = min(nb, 2048)
    if N >= 32:
        # Keep >= 2 grid steps so the "parallel" axis can split across the
        # two v7x TensorCores for moderate/large batches.
        nb = min(nb, -(-N // 2))
    nb = max(16, (nb // 16) * 16)                                # bf16 sublane mult.
    NB = min(nb, ((N + 15) // 16) * 16)
    N_pad = ((N + NB - 1) // NB) * NB
    num_blocks = N_pad // NB

    # ---- Build the four lane-dense input streams at final padded shape ---
    def pad_nc(a):
        return jnp.pad(a, ((0, N_pad - N), (0, Cp - C)))

    # Flat gather index: batch_offset + y*W + x; padded rows/cols are clamped
    # in-range (their weight is 0, so they contribute nothing).
    idx1 = jnp.clip(y1 * W + x1, 0, HW - 1)
    idx2 = jnp.clip(y2 * W + x2, 0, HW - 1)
    batch_off = (jnp.minimum(jnp.arange(N_pad, dtype=jnp.int32), N - 1)[:, None]
                 * jnp.int32(HW))                                # (N_pad, 1)

    img_flat = v_input[:, 0].reshape(N * HW).astype(jnp.float32)
    r1 = jnp.take(img_flat, pad_nc(idx1) + batch_off, axis=0)    # (N_pad, Cp) f32
    r2 = jnp.take(img_flat, pad_nc(idx2) + batch_off, axis=0)    # (N_pad, Cp) f32
    w_p = pad_nc(w)                                              # (N_pad, Cp) f32
    d_p = pad_nc(darker).astype(jnp.bfloat16)                    # (N_pad, Cp) bf16

    kernel = functools.partial(_whdr_kernel, delta=float(delta))

    block_out = pl.pallas_call(
        kernel,
        out_shape=jax.ShapeDtypeStruct((num_blocks * 8, 128), jnp.float32),
        grid=(num_blocks,),
        in_specs=[
            pl.BlockSpec((NB, Cp), lambda b: (b, 0)),            # r1
            pl.BlockSpec((NB, Cp), lambda b: (b, 0)),            # r2
            pl.BlockSpec((NB, Cp), lambda b: (b, 0)),            # w
            pl.BlockSpec((NB, Cp), lambda b: (b, 0)),            # darker (bf16)
        ],
        out_specs=pl.BlockSpec((8, 128), lambda b: (b, 0)),
        compiler_params=pltpu.CompilerParams(
            dimension_semantics=("parallel",)),
    )(r1, r2, w_p, d_p)

    block_sums = block_out.reshape(num_blocks, 8, 128)[:, 0, 0]  # (num_blocks,)
    total = jnp.sum(block_sums) / jnp.float32(N)                 # mean over batch
    return total.reshape(1)


def _reference(v_input, comparisons, num_comparisons, delta=0.1):
    """Plain-Python reference mirroring the PyTorch loop exactly."""
    v = np.asarray(v_input)
    comp = np.asarray(comparisons)
    nc = np.asarray(num_comparisons)
    N = v.shape[0]
    total = 0.0
    for b in range(N):
        loss = 0.0
        tw = 0.0
        for i in range(int(nc[b])):
            x1, y1, x2, y2, d, w = comp[b, i]
            x1, y1, x2, y2, d = int(x1), int(y1), int(x2), int(y2), int(d)
            w = float(w)
            tw += w
            r1 = float(v[b, 0, y1, x1])
            r2 = float(v[b, 0, y2, x2])
            ratio = r1 / (r2 + EPS)
            if d == 1:
                border = 1.0 / (1.0 + delta)
                if ratio > border:
                    loss += w * (ratio - border)
            elif d == 2:
                border = 1.0 + delta
                if ratio < border:
                    loss += w * (border - ratio)
            else:
                br = 1.0 + delta
                bl = 1.0 / br
                if ratio > br:
                    loss += w * (ratio - br)
                elif ratio < bl:
                    loss += w * (bl - ratio)
        total += loss / tw
    return total / N


if __name__ == "__main__":
    key = jax.random.PRNGKey(0)
    N, H, W, C = 2, 16, 16, 8

    k_img, k_x1, k_y1, k_x2, k_y2, k_d, k_w = jax.random.split(key, 7)

    v_input = jax.random.uniform(k_img, (N, 1, H, W), jnp.float32,
                                 minval=0.05, maxval=1.0)

    x1 = jax.random.randint(k_x1, (N, C), 0, W)
    y1 = jax.random.randint(k_y1, (N, C), 0, H)
    x2 = jax.random.randint(k_x2, (N, C), 0, W)
    y2 = jax.random.randint(k_y2, (N, C), 0, H)
    darker = jax.random.randint(k_d, (N, C), 0, 3)
    weight = jax.random.uniform(k_w, (N, C), jnp.float32,
                                minval=0.1, maxval=1.0)

    comparisons = jnp.stack(
        [x1.astype(jnp.float32), y1.astype(jnp.float32),
         x2.astype(jnp.float32), y2.astype(jnp.float32),
         darker.astype(jnp.float32), weight], axis=-1)            # (N, C, 6)
    num_comparisons = jnp.array([8, 5], dtype=jnp.int32)

    out = whdr_test_loss(v_input, comparisons, num_comparisons, delta=0.1)
    out = jax.block_until_ready(out)

    ref = _reference(v_input, comparisons, num_comparisons, delta=0.1)
    assert np.allclose(np.asarray(out)[0], ref, rtol=1e-5, atol=1e-6), \
        (float(out[0]), float(ref))

    print("KERNEL_OK")
</pallas_src>

<mosaic_0001>
module attributes {stable_mosaic.version = 11 : i64} {
  func.func @_whdr_kernel(%arg0: i32, %arg1: memref<16x128xf32, #tpu.memory_space<vmem>>, %arg2: memref<16x128xf32, #tpu.memory_space<vmem>>, %arg3: memref<16x128xf32, #tpu.memory_space<vmem>>, %arg4: memref<16x128xbf16, #tpu.memory_space<vmem>>, %arg5: memref<8x128xf32, #tpu.memory_space<vmem>>) attributes {dimension_semantics = [#tpu.dimension_semantics<parallel>], iteration_bounds = array<i64: 1>, scalar_prefetch = 0 : i64, scratch_operands = 0 : i64, tpu.core_type = #tpu.core_type<tc>, window_params = [{transform_indices = @transform_0, window_bounds = array<i64: 16, 128>}, {transform_indices = @transform_1, window_bounds = array<i64: 16, 128>}, {transform_indices = @transform_2, window_bounds = array<i64: 16, 128>}, {transform_indices = @transform_3, window_bounds = array<i64: 16, 128>}, {transform_indices = @transform_4, window_bounds = array<i64: 8, 128>}]} {
    %c0 = arith.constant 0 : index
    %c0_0 = arith.constant 0 : index
    %0 = vector.load %arg1[%c0, %c0_0] : memref<16x128xf32, #tpu.memory_space<vmem>>, vector<16x128xf32>
    %c0_1 = arith.constant 0 : index
    %c0_2 = arith.constant 0 : index
    %1 = vector.load %arg2[%c0_1, %c0_2] : memref<16x128xf32, #tpu.memory_space<vmem>>, vector<16x128xf32>
    %c0_3 = arith.constant 0 : index
    %c0_4 = arith.constant 0 : index
    %2 = vector.load %arg3[%c0_3, %c0_4] : memref<16x128xf32, #tpu.memory_space<vmem>>, vector<16x128xf32>
    %c0_5 = arith.constant 0 : index
    %c0_6 = arith.constant 0 : index
    %3 = vector.load %arg4[%c0_5, %c0_6] : memref<16x128xbf16, #tpu.memory_space<vmem>>, vector<16x128xbf16>
    %4 = arith.extf %3 : vector<16x128xbf16> to vector<16x128xf32>
    %cst = arith.constant 1.000000e-10 : f32
    %5 = vector.broadcast %cst : f32 to vector<16x128xf32>
    %6 = arith.addf %1, %5 : vector<16x128xf32>
    %7 = tpu.reciprocal %6 : vector<16x128xf32> -> vector<16x128xf32>
    %8 = arith.mulf %0, %7 : vector<16x128xf32>
    %cst_7 = arith.constant 0.909090936 : f32
    %9 = vector.broadcast %cst_7 : f32 to vector<16x128xf32>
    %10 = arith.subf %8, %9 : vector<16x128xf32>
    %cst_8 = arith.constant 0.000000e+00 : f32
    %11 = vector.broadcast %cst_8 : f32 to vector<16x128xf32>
    %12 = arith.maximumf %10, %11 : vector<16x128xf32>
    %cst_9 = arith.constant 1.100000e+00 : f32
    %13 = vector.broadcast %cst_9 : f32 to vector<16x128xf32>
    %14 = arith.subf %13, %8 : vector<16x128xf32>
    %cst_10 = arith.constant 0.000000e+00 : f32
    %15 = vector.broadcast %cst_10 : f32 to vector<16x128xf32>
    %16 = arith.maximumf %14, %15 : vector<16x128xf32>
    %cst_11 = arith.constant 1.100000e+00 : f32
    %17 = vector.broadcast %cst_11 : f32 to vector<16x128xf32>
    %18 = arith.subf %8, %17 : vector<16x128xf32>
    %cst_12 = arith.constant 0.000000e+00 : f32
    %19 = vector.broadcast %cst_12 : f32 to vector<16x128xf32>
    %20 = arith.maximumf %18, %19 : vector<16x128xf32>
    %cst_13 = arith.constant 0.909090936 : f32
    %21 = vector.broadcast %cst_13 : f32 to vector<16x128xf32>
    %22 = arith.subf %21, %8 : vector<16x128xf32>
    %cst_14 = arith.constant 0.000000e+00 : f32
    %23 = vector.broadcast %cst_14 : f32 to vector<16x128xf32>
    %24 = arith.maximumf %22, %23 : vector<16x128xf32>
    %25 = arith.addf %20, %24 : vector<16x128xf32>
    %cst_15 = arith.constant 1.000000e+00 : f32
    %26 = vector.broadcast %cst_15 : f32 to vector<16x128xf32>
    %27 = arith.cmpf oeq, %4, %26 : vector<16x128xf32>
    %cst_16 = arith.constant 2.000000e+00 : f32
    %28 = vector.broadcast %cst_16 : f32 to vector<16x128xf32>
    %29 = arith.cmpf oeq, %4, %28 : vector<16x128xf32>
    %30 = arith.select %29, %16, %25 : vector<16x128xi1>, vector<16x128xf32>
    %31 = arith.select %27, %12, %30 : vector<16x128xi1>, vector<16x128xf32>
    %32 = arith.mulf %2, %31 : vector<16x128xf32>
    %cst_17 = arith.constant dense<0.000000e+00> : vector<16xf32>
    %33 = vector.multi_reduction <add>, %32, %cst_17 [1] : vector<16x128xf32> to vector<16xf32>
    %34 = vector.shape_cast %33 : vector<16xf32> to vector<16x1xf32>
    %cst_18 = arith.constant dense<0.000000e+00> : vector<16xf32>
    %35 = vector.multi_reduction <add>, %2, %cst_18 [1] : vector<16x128xf32> to vector<16xf32>
    %36 = vector.shape_cast %35 : vector<16xf32> to vector<16x1xf32>
    %cst_19 = arith.constant 1.000000e-10 : f32
    %37 = vector.broadcast %cst_19 : f32 to vector<16x1xf32>
    %38 = arith.maximumf %36, %37 : vector<16x1xf32>
    %39 = arith.divf %34, %38 : vector<16x1xf32>
    %cst_20 = arith.constant dense<0.000000e+00> : vector<1xf32>
    %40 = vector.multi_reduction <add>, %39, %cst_20 [0] : vector<16x1xf32> to vector<1xf32>
    %41 = vector.shape_cast %40 : vector<1xf32> to vector<1x1xf32>
    %42 = vector.shape_cast %41 : vector<1x1xf32> to vector<1x1xf32>
    %43 = vector.broadcast %42 : vector<1x1xf32> to vector<8x128xf32>
    %c0_21 = arith.constant 0 : index
    %c0_22 = arith.constant 0 : index
    %44 = vector.load %arg5[%c0_21, %c0_22] : memref<8x128xf32, #tpu.memory_space<vmem>>, vector<8x128xf32>
    tpu.vector_store %arg5[%c0_21, %c0_22], %43 {strides = array<i32>} : memref<8x128xf32, #tpu.memory_space<vmem>>, vector<8x128xf32>,
    return
  }
  func.func @transform_0(%arg0: i32) -> (i32, i32) {
    %c0_i32 = arith.constant 0 : i32
    %c0_i32_0 = arith.constant 0 : i32
    return %arg0, %c0_i32 : i32, i32
  }
  func.func @transform_1(%arg0: i32) -> (i32, i32) {
    %c0_i32 = arith.constant 0 : i32
    %c0_i32_0 = arith.constant 0 : i32
    return %arg0, %c0_i32 : i32, i32
  }
  func.func @transform_2(%arg0: i32) -> (i32, i32) {
    %c0_i32 = arith.constant 0 : i32
    %c0_i32_0 = arith.constant 0 : i32
    return %arg0, %c0_i32 : i32, i32
  }
  func.func @transform_3(%arg0: i32) -> (i32, i32) {
    %c0_i32 = arith.constant 0 : i32
    %c0_i32_0 = arith.constant 0 : i32
    return %arg0, %c0_i32 : i32, i32
  }
  func.func @transform_4(%arg0: i32) -> (i32, i32) {
    %c0_i32 = arith.constant 0 : i32
    %c0_i32_0 = arith.constant 0 : i32
    return %arg0, %c0_i32 : i32, i32
  }
}

</mosaic_0001>

<bundles_post_ra>
// kernel: tpu_custom_call.1
= control target key start
LH: loop header
LB: loop body
LE: loop exit
PB: predicated region body
PF: predicated region fallthrough
CT: control target
= control target key end

     0   :  { %9 = vsyncpa [#allocation3], 0  ;;  %s338_s0 = inlined_call_operand.hbm [shape: f32[16,128], index: 0, kind: input, shape index: {}]   ;;  %s339_s1 = inlined_call_operand.hbm [shape: f32[16,128], index: 1, kind: input, shape index: {}]   ;;  %s340_s2 = inlined_call_operand.hbm [shape: f32[16,128], index: 2, kind: input, shape index: {}]   ;;  %s341_s3 = inlined_call_operand.hbm [shape: bf16[16,128], index: 3, kind: input, shape index: {}]   ;;  %s342_s4 = inlined_call_operand.hbm [shape: f32[8,128], index: 4, kind: output, shape index: {}]  }
   0x1   :  { %10 = vsyncpa [#allocation6], 0 }
   0x2   :  { %11 = vsyncpa [#allocation9], 0 }
   0x3   :  { %12 = vsyncpa [#allocation4], 0  ;;  %s289_s15 = smov [#allocation5]   ;;  %s290_s17 = smov [#allocation2]  }
   0x4   :  { %s30_s16 = sshll.u32 %s289_s15, 4  ;;  %s18_s18 = sshll.u32 %s290_s17, 4  ;;  %s31_s16 = int_to_ptr.vmem [resolvable:$true] %s30_s16  ;;  %s19_s18 = int_to_ptr.vmem [resolvable:$true] %s18_s18 }
   0x5   :  { %s189_s19 = scalar_lea.vmem %s31_s16, 256  ;;  %p194_p1 = scmp.lt.s32.totalorder %s31_s16, %s31_s16 }
   0x6   :  { %p190_p0 = scmp.ne.s32.totalorder %s31_s16, %s189_s19  ;;  %p195_p2 = scmp.lt.s32.totalorder %s189_s19, %s189_s19 }
   0x8   :  { %p196_p3 = por %p195_p2, %p194_p1 }
   0xa   :  { %p197_p4 = pnand %p196_p3, %p190_p0 }
   0xc   :  { %200 = shalt.err (!%p197_p4)
}
   0xd   :  { %s291_s20 = smov 128   ;;  %s292_s21 = smov 8  }
   0xe   :  { %36 = dma.hbm_to_vmem [thread:$0]  %s339_s1, 256, %s31_s16, [#allocation6], %s291_s20, %s291_s20, %s292_s21  }
   0xf   :  { %s209_s24 = scalar_lea.vmem %s19_s18, 256  ;;  %p214_p6 = scmp.lt.s32.totalorder %s19_s18, %s19_s18 }
  0x10   :  { %p210_p5 = scmp.ne.s32.totalorder %s19_s18, %s209_s24  ;;  %p215_p7 = scmp.lt.s32.totalorder %s209_s24, %s209_s24 }
  0x12   :  { %p216_p8 = por %p215_p7, %p214_p6 }
  0x14   :  { %p217_p9 = pnand %p216_p8, %p210_p5 }
  0x16   :  { %220 = shalt.err (!%p217_p9)
}
  0x17   :  { %24 = dma.hbm_to_vmem [thread:$0]  %s338_s0, 256, %s19_s18, [#allocation3], %s291_s20, %s291_s20, %s292_s21  }
  0x18   :  { %s293_s27 = smov [#allocation7]   ;;  %s294_s29 = smov [#allocation8]  }
  0x19   :  { %s42_s28 = sshll.u32 %s293_s27, 4  ;;  %s54_s30 = sshll.u32 %s294_s29, 4  ;;  %s43_s28 = int_to_ptr.vmem [resolvable:$true] %s42_s28  ;;  %s55_s30 = int_to_ptr.vmem [resolvable:$true] %s54_s30 }
  0x1a   :  { %s229_s5 = scalar_lea.vmem %s43_s28, 256  ;;  %p234_p11 = scmp.lt.s32.totalorder %s43_s28, %s43_s28 }
  0x1b   :  { %p230_p10 = scmp.ne.s32.totalorder %s43_s28, %s229_s5  ;;  %p235_p12 = scmp.lt.s32.totalorder %s229_s5, %s229_s5 }
  0x1d   :  { %p236_p13 = por %p235_p12, %p234_p11 }
  0x1f   :  { %p237_p0 = pnand %p236_p13, %p230_p10 }
  0x21   :  { %240 = shalt.err (!%p237_p0)
}
  0x22   :  { %48 = dma.hbm_to_vmem [thread:$0]  %s340_s2, 256, %s43_s28, [#allocation6], %s291_s20, %s291_s20, %s292_s21  }
  0x23   :  { %s249_s7 = scalar_lea.vmem %s55_s30, 128  ;;  %p254_p2 = scmp.lt.s32.totalorder %s55_s30, %s55_s30 }
  0x24   :  { %p250_p1 = scmp.ne.s32.totalorder %s55_s30, %s249_s7  ;;  %p255_p3 = scmp.lt.s32.totalorder %s249_s7, %s249_s7 }
  0x26   :  { %p256_p4 = por %p255_p3, %p254_p2 }
  0x28   :  { %p257_p5 = pnand %p256_p4, %p250_p1 }
  0x2a   :  { %260 = shalt.err (!%p257_p5)
}
  0x2b   :  { %s295_s0 = smov 64   ;;  %s296_s8 = smov 4  }
  0x2c   :  { %60 = dma.hbm_to_vmem [thread:$0]  %s341_s3, 128, %s55_s30, [#allocation9], %s295_s0, %s295_s0, %s296_s8  }
  0x2d   :  { %281 = dma.done.wait [#allocation3], 256  }
  0x2e   :  { %282 = vsyncadd [#allocation3], 4294967040 }
  0x2f   :  { %283 = dma.done.wait [#allocation6], 512  }
  0x30   :  { %284 = vsyncadd [#allocation6], 4294966784 }
  0x31   :  { %285 = dma.done.wait [#allocation9], 128  }
  0x32   :  { %286 = vsyncadd [#allocation9], 4294967168  ;;  %v77_v0 = vld [vmem:[#allocation7] sm:$0xff]  ;;  %v75_v1 = vld [vmem:[#allocation5] sm:$0xff]  ;;  %s297_s2 = smov [#allocation10]  }
  0x33   :  { %121 = vadd.xlane.f32.xlu0 %v77_v0  ;;  %v78_v2 = vld [vmem:[#allocation7 + $0x8] sm:$0xff]  ;;  %v83_v3 = vadd.f32 1e-10, %v75_v1  ;;  %v76_v4 = vld [vmem:[#allocation5 + $0x8] sm:$0xff]  ;;  %v73_v6 = vld [vmem:[#allocation2] sm:$0xff]  ;;  %s145_s3 = sshll.u32 %s297_s2, 4  ;;  %s146_s3 = int_to_ptr.vmem [resolvable:$true] %s145_s3 }
  0x34   :  { %v84_v5 = vadd.f32 1e-10, %v76_v4  ;;  %v74_v7 = vld [vmem:[#allocation2 + $0x8] sm:$0xff]  ;;  %v161_v9 = vld [vmem:[#allocation8] sm:$0xff]   ;;  %s261_s11 = scalar_lea.vmem %s146_s3, 128  ;;  %p266_p7 = scmp.lt.s32.totalorder %s146_s3, %s146_s3 }
  0x35   :  { %173 = vrcp.f32 %v83_v3  ;;  %v162_v13 = vunpack.c.l.bf16 %v161_v9  ;;  %v163_v20 = vunpack.c.h.bf16 %v161_v9  ;;  %p262_p6 = scmp.ne.s32.totalorder %s146_s3, %s261_s11  ;;  %p267_p8 = scmp.lt.s32.totalorder %s261_s11, %s261_s11 }
  0x36   :  { %175 = vrcp.f32 %v84_v5 }
  0x37   :  { %123 = vadd.xlane.f32.xlu0 %v78_v2  ;;  %vm109_vm0 = vcmp.eq.f32.partialorder %v162_v13, 2.0  ;;  %vm107_vm1 = vcmp.eq.f32.partialorder %v162_v13, 1.0  ;;  %vm110_vm2 = vcmp.eq.f32.partialorder %v163_v20, 2.0  ;;  %vm108_vm3 = vcmp.eq.f32.partialorder %v163_v20, 1.0  ;;  %p268_p9 = por %p267_p8, %p266_p7 }
  0x39   :  { %p269_p10 = pnand %p268_p9, %p262_p6 }
  0x42   :  { %v174_v8 = vpop.eup %173 }
  0x43   :  { %v176_v10 = vpop.eup %175  ;;  %v87_v11 = vmul.f32 %v174_v8, %v73_v6 }
  0x44   :  { %v88_v12 = vmul.f32 %v176_v10, %v74_v7 }
  0x45   :  { %v156_v14 = vadd.f32 -0.90909094, %v87_v11  ;;  %v93_v15 = vsub.f32 1.1, %v87_v11  ;;  %v158_v16 = vadd.f32 -1.1, %v87_v11 }
  0x46   :  { %v101_v17 = vsub.f32 0.90909094, %v87_v11  ;;  %v94_v18 = vsub.f32 1.1, %v88_v12  ;;  %v157_v21 = vadd.f32 -0.90909094, %v88_v12 }
  0x47   :  { %v99_v19 = vmax.f32 %v158_v16, 0.0  ;;  %v159_v22 = vadd.f32 -1.1, %v88_v12  ;;  %v95_v23 = vmax.f32 %v93_v15, 0.0  ;;  %v102_v25 = vsub.f32 0.90909094, %v88_v12 }
  0x48   :  { %v103_v24 = vmax.f32 %v101_v17, 0.0  ;;  %v91_v26 = vmax.f32 %v156_v14, 0.0  ;;  %v96_v29 = vmax.f32 %v94_v18, 0.0  ;;  %v92_v31 = vmax.f32 %v157_v21, 0.0 }
  0x49   :  { %v100_v27 = vmax.f32 %v159_v22, 0.0  ;;  %v104_v30 = vmax.f32 %v102_v25, 0.0 }
  0x4a   :  { %v105_v28 = vadd.f32 %v103_v24, %v99_v19 }
  0x4b   :  { %v106_v33 = vadd.f32 %v104_v30, %v100_v27 }
  0x4c   :  { %v111_v32 = vsel %vm109_vm0, %v95_v23, %v105_v28 }
  0x4d   :  { %v113_v34 = vsel %vm107_vm1, %v91_v26, %v111_v32  ;;  %v112_v36 = vsel %vm110_vm2, %v96_v29, %v106_v33 }
  0x4e   :  { %v115_v35 = vmul.f32 %v113_v34, %v77_v0  ;;  %v114_v37 = vsel %vm108_vm3, %v92_v31, %v112_v36 }
  0x4f   :  { %v116_v38 = vmul.f32 %v114_v37, %v78_v2 }
  0x50   :  { %117 = vadd.xlane.f32.xlu1 %v115_v35 }
  0x54   :  { %119 = vadd.xlane.f32.xlu1 %v116_v38 }
  0xbc   :  { %v122_v39 = vpop.xlane.xlu0 %121 }
  0xbd   :  { %v125_v41 = vmax.f32 %v122_v39, 1e-10 }
  0xbf   :  { %177 = vrcp.f32 %v125_v41 }
  0xc0   :  { %v124_v40 = vpop.xlane.xlu0 %123 }
  0xc1   :  { %v126_v42 = vmax.f32 %v124_v40, 1e-10 }
  0xc3   :  { %179 = vrcp.f32 %v126_v42 }
  0xcc   :  { %v178_v44 = vpop.eup %177 }
  0xd0   :  { %v180_v45 = vpop.eup %179 }
  0xd9   :  { %v118_v43 = vpop.xlane.xlu1 %117 }
  0xda   :  { %v128_v47 = vmul.f32 %v178_v44, %v118_v43 }
  0xdd   :  { %v120_v46 = vpop.xlane.xlu1 %119 }
  0xde   :  { %v130_v48 = vmul.f32 %v180_v45, %v120_v46 }
  0xe0   :  { %v131_v49 = vadd.f32 %v130_v48, %v128_v47 }
  0xe2   :  { %v132_v50 = vrot.slane %v131_v49, 4 }
  0xe4   :  { %v133_v51 = vadd.f32 %v132_v50, %v131_v49 }
  0xe6   :  { %v134_v52 = vrot.slane %v133_v51, 2 }
  0xe8   :  { %v135_v53 = vadd.f32 %v134_v52, %v133_v51 }
  0xea   :  { %v136_v54 = vrot.slane %v135_v53, 1 }
  0xec   :  { %v137_v55 = vadd.f32 %v136_v54, %v135_v53 }
  0xee   :  { %138 = vst [vmem:[#allocation10] sm:$0xff] %v137_v55 }
  0xef   :  { %272 = shalt.err (!%p269_p10)
}
  0xf0   :  { %148 = dma.vmem_to_hbm [thread:$0]  %s146_s3, 128, %s342_s4, [#allocation4]  }
  0xf1   :  { %287 = dma.done.wait [#allocation4], 128  }
  0xf2   :  { %288 = vsyncadd [#allocation4], 4294967168 }
  0xf3   :  { %152 = vsyncpa [#allocation3], 1 }
  0xf4   :  { %153 = vsyncpa [#allocation6], 1 }
  0xf5   :  { %154 = vsyncpa [#allocation9], 1 }
  0xf6   :  { %155 = vsyncpa [#allocation4], 1 }

</bundles_post_ra>
